<compile_context>
chip_gen: v5e
topology: v5e:2x2
jax: 0.10.0
libtpu: 0.0.40
codegen_flags: <defaults>
</compile_context>

<pallas_src>
import jax
import jax.numpy as jnp
from jax import lax
from jax.experimental import pallas as pl
from jax.experimental.pallas import tpu as pltpu

N_ATOMS = 23
FEAT = 3 * N_ATOMS          # 69


# ----------------------------------------------------------------------------
# Single-sample path (matches ParallelModel.forward(positions) exactly)
# ----------------------------------------------------------------------------
def energy_kernel(x_ref, w_ref, b_ref, o_ref):
    # x_ref, w_ref: (1, 69) f32 in VMEM; b_ref, o_ref: (1, 1) f32 in SMEM.
    prod = x_ref[...] * w_ref[...]                   # VPU elementwise
    o_ref[0, 0] = jnp.sum(prod) + b_ref[0, 0]        # lane reduce -> SMEM scalar


def make_energy_fn(w0, b0, w1, b1):
    """Fold the two Linear layers once; return a jitted positions->energy fn."""
    w_sum = (w0 + w1).reshape(1, FEAT).astype(jnp.float32)          # (1, 69)
    b_sum = (b0 + b1).reshape(1, 1).astype(jnp.float32)             # (1, 1)

    @jax.jit
    def energy_fn(positions):                                       # (23, 3)
        x = positions.reshape(1, FEAT).astype(jnp.float32)          # (1, 69)
        out = pl.pallas_call(
            energy_kernel,
            out_shape=jax.ShapeDtypeStruct((1, 1), jnp.float32),
            in_specs=[
                pl.BlockSpec(memory_space=pltpu.MemorySpace.VMEM),  # x
                pl.BlockSpec(memory_space=pltpu.MemorySpace.VMEM),  # w_sum
                pl.BlockSpec(memory_space=pltpu.MemorySpace.SMEM),  # b_sum
            ],
            out_specs=pl.BlockSpec(memory_space=pltpu.MemorySpace.SMEM),
        )(x, w_sum, b_sum)
        return out.reshape(1)   # torch Linear on a 1-D input -> shape (1,)

    return energy_fn


# ----------------------------------------------------------------------------
# Batched path (many configurations per call; HBM-streaming, big row tiles)
# ----------------------------------------------------------------------------
def batched_energy_kernel(x_ref, w_ref, o_ref):
    # x_ref: (tile_b, 69) VMEM; w_ref: (1, 69) VMEM; o_ref: (1, tile_b) VMEM.
    # Lane-dense output: (1,K) x (tile_b,K) contracting K -> (1, tile_b).
    o_ref[...] = lax.dot_general(
        w_ref[...], x_ref[...],
        dimension_numbers=(((1,), (1,)), ((), ())),
        preferred_element_type=jnp.float32,
    )


def make_batched_energy_fn(w0, b0, w1, b1, *, tile_b=2048):
    # tile_b must be a multiple of 128 so the (1, tile_b) output block is
    # lane-aligned; 2048 rows ~ 565 KiB of x per buffer (fits all gens'
    # default scoped VMEM with double-buffering, incl. v5e's 16 MiB).
    assert tile_b % 128 == 0
    w_sum = (w0 + w1).reshape(1, FEAT).astype(jnp.float32)          # (1, 69)
    b_sum = jnp.asarray(b0 + b1, jnp.float32).reshape(())           # scalar

    @jax.jit
    def energy_fn(positions_batch):                                 # (B, 23, 3)
        B = positions_batch.shape[0]
        x = positions_batch.reshape(B, FEAT).astype(jnp.float32)    # (B, 69)
        n_tiles = pl.cdiv(B, tile_b)
        b_pad = n_tiles * tile_b
        if b_pad != B:                                              # remainder tile
            x = jnp.pad(x, ((0, b_pad - B), (0, 0)))
        out = pl.pallas_call(
            batched_energy_kernel,
            out_shape=jax.ShapeDtypeStruct((1, b_pad), jnp.float32),
            grid=(n_tiles,),
            in_specs=[
                # last dim 69 == full array dim -> (8,128) rule satisfied,
                # DMA stays contiguous and unpadded.
                pl.BlockSpec((tile_b, FEAT), lambda i: (i, 0)),
                pl.BlockSpec((1, FEAT), lambda i: (0, 0)),
            ],
            out_specs=pl.BlockSpec((1, tile_b), lambda i: (0, i)),
            compiler_params=pltpu.CompilerParams(
                dimension_semantics=("parallel",)),
        )(x, w_sum)
        # Bias added in the wrapper (fuses under jit); drop padded rows.
        return (out[0, :B] + b_sum).reshape(B, 1)

    return energy_fn


if __name__ == "__main__":
    key = jax.random.PRNGKey(0)
    k_pos, k_w0, k_b0, k_w1, k_b1, k_bat1, k_bat2 = jax.random.split(key, 7)

    # Deterministic synthetic parameters (shapes from nn.Linear(69, 1)).
    bound = 1.0 / (FEAT ** 0.5)
    w0 = jax.random.uniform(k_w0, (1, FEAT), jnp.float32, -bound, bound)
    b0 = jax.random.uniform(k_b0, (1,), jnp.float32, -bound, bound)
    w1 = jax.random.uniform(k_w1, (1, FEAT), jnp.float32, -bound, bound)
    b1 = jax.random.uniform(k_b1, (1,), jnp.float32, -bound, bound)

    # --- single-sample path (spec semantics) ---
    positions = jax.random.normal(k_pos, (N_ATOMS, 3), jnp.float32)
    energy_fn = make_energy_fn(w0, b0, w1, b1)
    energy = jax.block_until_ready(energy_fn(positions))

    x = positions.reshape(-1)
    ref = (w0 @ x + b0) + (w1 @ x + b1)
    assert energy.shape == (1,)
    assert jnp.allclose(energy, ref, atol=1e-5, rtol=1e-5)

    # --- batched path: small tile + non-divisible batch (remainder handling) ---
    B1 = 300
    batch1 = jax.random.normal(k_bat1, (B1, N_ATOMS, 3), jnp.float32)
    fn_small = make_batched_energy_fn(w0, b0, w1, b1, tile_b=256)   # 2 tiles
    e1 = jax.block_until_ready(fn_small(batch1))
    ref1 = batch1.reshape(B1, FEAT) @ (w0 + w1).T + (b0 + b1)
    assert e1.shape == (B1, 1)
    assert jnp.allclose(e1, ref1, atol=1e-4, rtol=1e-4)

    # --- batched path: production default tile (2048), multi-tile + remainder ---
    B2 = 2500
    batch2 = jax.random.normal(k_bat2, (B2, N_ATOMS, 3), jnp.float32)
    fn_big = make_batched_energy_fn(w0, b0, w1, b1)                 # tile_b=2048
    e2 = jax.block_until_ready(fn_big(batch2))
    ref2 = batch2.reshape(B2, FEAT) @ (w0 + w1).T + (b0 + b1)
    assert e2.shape == (B2, 1)
    assert jnp.allclose(e2, ref2, atol=1e-4, rtol=1e-4)

    print("KERNEL_OK")
</pallas_src>

<mosaic_0001>
module attributes {stable_mosaic.version = 11 : i64} {
  func.func @energy_kernel(%arg0: memref<1x69xf32, #tpu.memory_space<vmem>>, %arg1: memref<1x69xf32, #tpu.memory_space<vmem>>, %arg2: memref<1x1xf32, #tpu.memory_space<smem>>, %arg3: memref<1x1xf32, #tpu.memory_space<smem>>) attributes {dimension_semantics = [], scalar_prefetch = 0 : i64, scratch_operands = 0 : i64, tpu.core_type = #tpu.core_type<tc>} {
    %c0 = arith.constant 0 : index
    %c0_0 = arith.constant 0 : index
    %0 = vector.load %arg0[%c0, %c0_0] : memref<1x69xf32, #tpu.memory_space<vmem>>, vector<1x69xf32>
    %c0_1 = arith.constant 0 : index
    %c0_2 = arith.constant 0 : index
    %1 = vector.load %arg1[%c0_1, %c0_2] : memref<1x69xf32, #tpu.memory_space<vmem>>, vector<1x69xf32>
    %2 = arith.mulf %0, %1 : vector<1x69xf32>
    %3 = vector.shape_cast %2 : vector<1x69xf32> to vector<1x1x69xf32>
    %cst = arith.constant dense<0.000000e+00> : vector<1xf32>
    %4 = vector.multi_reduction <add>, %3, %cst [1, 2] : vector<1x1x69xf32> to vector<1xf32>
    %5 = vector.shape_cast %4 : vector<1xf32> to vector<1x1x1xf32>
    %6 = vector.extract %5[0, 0, 0] : f32 from vector<1x1x1xf32>
    %c0_3 = arith.constant 0 : index
    %c0_4 = arith.constant 0 : index
    %7 = memref.load %arg2[%c0_3, %c0_4] : memref<1x1xf32, #tpu.memory_space<smem>>
    %8 = arith.addf %6, %7 : f32
    %c0_5 = arith.constant 0 : index
    %c0_6 = arith.constant 0 : index
    %9 = memref.load %arg3[%c0_5, %c0_6] : memref<1x1xf32, #tpu.memory_space<smem>>
    memref.store %8, %arg3[%c0_5, %c0_6] : memref<1x1xf32, #tpu.memory_space<smem>>
    return
  }
}

</mosaic_0001>

<bundles_post_ra>
// kernel: energy_fn.1
= control target key start
LH: loop header
LB: loop body
LE: loop exit
PB: predicated region body
PF: predicated region fallthrough
CT: control target
= control target key end

     0   :  { %vm19_vm0 = vcmask 557056   ;;  %s99_s0 = inlined_call_operand.vmem [shape: f32[1,69], index: 0, kind: input, shape index: {}]   ;;  %s100_s1 = inlined_call_operand.vmem [shape: f32[1,69], index: 1, kind: input, shape index: {}]   ;;  %s101_s2 = inlined_call_operand.<no memory space> [shape: f32[1,1], index: 2, kind: input, shape index: {}]   ;;  %s102_s3 = inlined_call_operand.hbm [shape: f32[1,1], index: 3, kind: output, shape index: {}]  }
   0x1   :  { %v16_v0 = vld [vmem:[%s99_s0] sm:$0x1] }
   0x2   :  { %v17_v1 = vld [vmem:[%s100_s1] sm:$0x1] }
   0x3   :  { %v18_v2 = vmul.f32 %v17_v1, %v16_v0 }
   0x4   :  { %9 = vsyncpa [#allocation4], 0  ;;  %s39_s0 = sshll.u32 %s102_s3, 4  ;;  %s66_s21 = smov [#allocation3]   ;;  %s40_s0 = int_to_ptr.hbm [resolvable:$true] %s39_s0 }
   0x5   :  { %v20_v3 = vsel %vm19_vm0, %v18_v2, 0.0 }
   0x6   :  { %21 = vadd.xlane.f32.xlu0 %v20_v3 }
  0x79   :  { %v22_v4 = vpop.xlane.xlu0 %21 }
  0x7a   :  { %v23_v5 = vrot.slane %v22_v4, 4 }
  0x7c   :  { %v24_v6 = vadd.f32 %v23_v5, %v22_v4 }
  0x7e   :  { %v25_v7 = vrot.slane %v24_v6, 2 }
  0x80   :  { %v26_v8 = vadd.f32 %v25_v7, %v24_v6 }
  0x82   :  { %v27_v9 = vrot.slane %v26_v8, 1 }
  0x84   :  { %v28_v10 = vadd.f32 %v27_v9, %v26_v8 }
  0x86   :  { %49 = vpush %v28_v10 }
  0xb7   :  { %s50_s18 = spop %49 }
  0xb8   :  { %s31_s20 = sadd.f32 %s50_s18, %s101_s2 }
  0xba   :  { %33 = sst [smem:[#allocation3]] %s31_s20 }
  0xbb   :  { %42 = dma.smem_to_hbm %s66_s21, 16, %s40_s0, [#allocation4]  }
  0xbc   :  { %64 = dma.done.wait [#allocation4], 16  }
  0xbd   :  { %65 = vsyncadd [#allocation4], 4294967280 }
  0xbe   :  { %47 = sfence }
  0xbf   :  { %48 = vsyncpa [#allocation4], 1 }

</bundles_post_ra>
